<compile_context>
chip_gen: v7x
topology: tpu7x:2x2x1
jax: 0.10.0
libtpu: 0.0.40
codegen_flags: <defaults>
</compile_context>

<pallas_src>
import functools

import numpy as np
import jax
import jax.numpy as jnp
from jax.experimental import pallas as pl
from jax.experimental.pallas import tpu as pltpu

LANE = 128     # vreg lane width
SUBLANE = 8    # vreg sublane count (f32)


def _round_up(x, m):
    return ((x + m - 1) // m) * m


def orthogonal_init(key, out_dim, in_dim, gain):
    """Deterministic orthogonal init matching nn.init.orthogonal_ semantics
    (returns a (out_dim, in_dim) matrix with orthonormal rows/cols, scaled by gain)."""
    rows, cols = out_dim, in_dim
    flat = jax.random.normal(key, (max(rows, cols), min(rows, cols)), dtype=jnp.float32)
    q, r = jnp.linalg.qr(flat)
    d = jnp.sign(jnp.diag(r))
    q = q * d[None, :]
    if rows < cols:
        q = q.T
    return gain * q[:rows, :cols]


# ----------------------------------------------------------------------------
# Kernel
# ----------------------------------------------------------------------------
def mlp_beta_kernel(x_ref, w1_ref, b1_ref, w2_ref, b2_ref, w3_ref, b3_ref, o_ref):
    # fc1 + tanh   (padded hidden columns: tanh(0 + 0) = 0, so they stay zero)
    h1 = jnp.tanh(
        jnp.dot(x_ref[...], w1_ref[...], preferred_element_type=jnp.float32)
        + b1_ref[...]
    )
    # fc2 + tanh
    h2 = jnp.tanh(
        jnp.dot(h1, w2_ref[...], preferred_element_type=jnp.float32)
        + b2_ref[...]
    )
    # fc3 + softplus (numerically stable: max(z,0) + log1p(exp(-|z|)))
    z = (
        jnp.dot(h2, w3_ref[...], preferred_element_type=jnp.float32)
        + b3_ref[...]
    )
    # Padded output columns compute softplus(0)=log(2); they are sliced off in
    # the wrapper, so the full (block_batch, act_pad) store stays lane-dense.
    o_ref[...] = jnp.maximum(z, 0.0) + jnp.log1p(jnp.exp(-jnp.abs(z)))


# ----------------------------------------------------------------------------
# One-time parameter preparation (hoisted out of the forward pass)
# ----------------------------------------------------------------------------
def prepare_params(w1, b1, w2, b2, w3, b3):
    """Lane-pad feature dims to multiples of 128 (zeros keep the math exact).

    w*: (in, out) float arrays; b*: (out,) or (1, out).
    Returns a tuple of padded device arrays to be passed to mlp_beta_forward.
    """
    f32 = jnp.float32
    state_dim, fc1_dim = w1.shape
    fc2_dim = w2.shape[1]
    action_dim = w3.shape[1]

    fc1_p = _round_up(fc1_dim, LANE)
    fc2_p = _round_up(fc2_dim, LANE)
    act_p = _round_up(action_dim, LANE)
    # state_dim is only the contraction K; left as-is.

    w1p = jnp.zeros((state_dim, fc1_p), f32).at[:, :fc1_dim].set(jnp.asarray(w1, f32))
    b1p = jnp.zeros((1, fc1_p), f32).at[:, :fc1_dim].set(jnp.reshape(jnp.asarray(b1, f32), (1, -1)))
    w2p = jnp.zeros((fc1_p, fc2_p), f32).at[:fc1_dim, :fc2_dim].set(jnp.asarray(w2, f32))
    b2p = jnp.zeros((1, fc2_p), f32).at[:, :fc2_dim].set(jnp.reshape(jnp.asarray(b2, f32), (1, -1)))
    w3p = jnp.zeros((fc2_p, act_p), f32).at[:fc2_dim, :action_dim].set(jnp.asarray(w3, f32))
    b3p = jnp.zeros((1, act_p), f32).at[:, :action_dim].set(jnp.reshape(jnp.asarray(b3, f32), (1, -1)))

    params = (w1p, b1p, w2p, b2p, w3p, b3p)
    return jax.tree.map(jax.device_put, params)


def _vmem_cap_bytes():
    """Generation-aware VMEM clamp; safe 32 MiB fallback (fits v5e/v6e/v7x)."""
    try:
        info = pltpu.get_tpu_info()
        phys = int(info.vmem_capacity_bytes)
        return max(phys // 2, 32 * 1024 * 1024)
    except Exception:
        return 32 * 1024 * 1024


def _weight_spec(shape):
    """Grid-invariant spec; single-buffered so the resident weights aren't duplicated."""
    try:
        return pl.BlockSpec(shape, lambda i: (0, 0), pipeline_mode=pl.Buffered(1))
    except Exception:
        return pl.BlockSpec(shape, lambda i: (0, 0))


# ----------------------------------------------------------------------------
# Forward pass (jitted; padding of x + pallas_call + output slice fused)
# ----------------------------------------------------------------------------
@functools.partial(jax.jit, static_argnames=("action_dim", "block_batch"))
def mlp_beta_forward(x, params, *, action_dim, block_batch=None):
    """x: (B, state_dim) float; params: output of prepare_params."""
    w1p, b1p, w2p, b2p, w3p, b3p = params
    B, state_dim = x.shape
    fc1_p = w1p.shape[1]
    fc2_p = w2p.shape[1]
    act_p = w3p.shape[1]
    f32 = jnp.float32

    # ---- batch tiling: >=2 grid steps when possible (v7x megacore), big tiles ----
    if block_batch is None:
        b8 = _round_up(B, SUBLANE)
        if b8 <= 2 * SUBLANE:
            block_batch = b8                                   # too small to split
        else:
            block_batch = min(_round_up((b8 + 1) // 2, SUBLANE), 4096)
    block_batch = _round_up(int(block_batch), SUBLANE)

    B_pad = _round_up(B, block_batch)
    x = x.astype(f32)
    if B_pad != B:
        x = jnp.pad(x, ((0, B_pad - B), (0, 0)))   # zero rows -> harmless, sliced off
    grid = (B_pad // block_batch,)

    # ---- un-hedged VMEM footprint estimate (weights single-buffered) ----
    weight_bytes = 4 * (state_dim * fc1_p + fc1_p
                        + fc1_p * fc2_p + fc2_p
                        + fc2_p * act_p + act_p)
    act_bytes = 4 * block_batch * (2 * state_dim      # x, double buffered
                                   + 2 * act_p        # out, double buffered
                                   + fc1_p + fc2_p + act_p)   # live h1/h2/z
    est_bytes = weight_bytes + act_bytes
    vmem_limit = int(min(max(est_bytes * 3 // 2, 4 * 1024 * 1024), _vmem_cap_bytes()))

    out_p = pl.pallas_call(
        mlp_beta_kernel,
        out_shape=jax.ShapeDtypeStruct((B_pad, act_p), f32),
        grid_spec=pltpu.PrefetchScalarGridSpec(
            num_scalar_prefetch=0,
            grid=grid,
            in_specs=[
                pl.BlockSpec((block_batch, state_dim), lambda i: (i, 0)),
                _weight_spec((state_dim, fc1_p)),
                _weight_spec((1, fc1_p)),
                _weight_spec((fc1_p, fc2_p)),
                _weight_spec((1, fc2_p)),
                _weight_spec((fc2_p, act_p)),
                _weight_spec((1, act_p)),
            ],
            out_specs=pl.BlockSpec((block_batch, act_p), lambda i: (i, 0)),
        ),
        compiler_params=pltpu.CompilerParams(
            dimension_semantics=("parallel",),
            vmem_limit_bytes=vmem_limit,
        ),
    )(x, w1p, b1p, w2p, b2p, w3p, b3p)

    return out_p[:B, :action_dim]


def _reference(x, w1, b1, w2, b2, w3, b3):
    h = jnp.tanh(x @ w1 + jnp.reshape(b1, (1, -1)))
    h = jnp.tanh(h @ w2 + jnp.reshape(b2, (1, -1)))
    z = h @ w3 + jnp.reshape(b3, (1, -1))
    return jnp.maximum(z, 0.0) + jnp.log1p(jnp.exp(-jnp.abs(z)))


if __name__ == "__main__":
    # Small shapes consistent with the module's forward pass.
    batch = 8
    state_dim = 16
    fc1_dim = 32
    fc2_dim = 32
    action_dim = 8

    key = jax.random.PRNGKey(0)
    k_x, k1, k2, k3, k_x2 = jax.random.split(key, 5)

    gain = float(np.sqrt(2.0))
    # PyTorch Linear weight is (out, in); we transpose to (in, out) for the kernel.
    w1 = orthogonal_init(k1, fc1_dim, state_dim, gain).T          # (state_dim, fc1_dim)
    b1 = jnp.zeros((fc1_dim,), dtype=jnp.float32)
    w2 = orthogonal_init(k2, fc2_dim, fc1_dim, gain).T            # (fc1_dim, fc2_dim)
    b2 = jnp.zeros((fc2_dim,), dtype=jnp.float32)
    w3 = orthogonal_init(k3, action_dim, fc2_dim, gain).T         # (fc2_dim, action_dim)
    b3 = jnp.zeros((action_dim,), dtype=jnp.float32)

    # One-time padded parameter prep (hoisted out of the forward).
    params = prepare_params(w1, b1, w2, b2, w3, b3)

    # ---- check 1: tiny batch (single grid step) ----
    x = jax.random.normal(k_x, (batch, state_dim), dtype=jnp.float32)
    out = jax.block_until_ready(mlp_beta_forward(x, params, action_dim=action_dim))
    ref = _reference(x, w1, b1, w2, b2, w3, b3)
    np.testing.assert_allclose(np.asarray(out), np.asarray(ref), rtol=1e-5, atol=1e-5)
    assert out.shape == (batch, action_dim)

    # ---- check 2: ragged batch, default tiling (>=2 grid steps, padded batch) ----
    x2 = jax.random.normal(k_x2, (200, state_dim), dtype=jnp.float32)
    out2 = jax.block_until_ready(mlp_beta_forward(x2, params, action_dim=action_dim))
    ref2 = _reference(x2, w1, b1, w2, b2, w3, b3)
    np.testing.assert_allclose(np.asarray(out2), np.asarray(ref2), rtol=1e-5, atol=1e-5)
    assert out2.shape == (200, action_dim)

    # ---- check 3: explicit block_batch (multi-step grid, jit cache with static arg) ----
    out3 = jax.block_until_ready(
        mlp_beta_forward(x2, params, action_dim=action_dim, block_batch=64)
    )
    np.testing.assert_allclose(np.asarray(out3), np.asarray(ref2), rtol=1e-5, atol=1e-5)

    print("KERNEL_OK")
</pallas_src>

<mosaic_0001>
module attributes {stable_mosaic.version = 11 : i64} {
  func.func @mlp_beta_kernel(%arg0: i32, %arg1: memref<8x16xf32, #tpu.memory_space<vmem>>, %arg2: memref<16x128xf32, #tpu.memory_space<vmem>>, %arg3: memref<1x128xf32, #tpu.memory_space<vmem>>, %arg4: memref<128x128xf32, #tpu.memory_space<vmem>>, %arg5: memref<1x128xf32, #tpu.memory_space<vmem>>, %arg6: memref<128x128xf32, #tpu.memory_space<vmem>>, %arg7: memref<1x128xf32, #tpu.memory_space<vmem>>, %arg8: memref<8x128xf32, #tpu.memory_space<vmem>>) attributes {dimension_semantics = [#tpu.dimension_semantics<parallel>], iteration_bounds = array<i64: 1>, scalar_prefetch = 0 : i64, scratch_operands = 0 : i64, tpu.core_type = #tpu.core_type<tc>, window_params = [{transform_indices = @transform_0, window_bounds = array<i64: 8, 16>}, {pipeline_mode = #tpu.pipeline_mode<synchronous>, transform_indices = @transform_1, window_bounds = array<i64: 16, 128>}, {pipeline_mode = #tpu.pipeline_mode<synchronous>, transform_indices = @transform_2, window_bounds = array<i64: 1, 128>}, {pipeline_mode = #tpu.pipeline_mode<synchronous>, transform_indices = @transform_3, window_bounds = array<i64: 128, 128>}, {pipeline_mode = #tpu.pipeline_mode<synchronous>, transform_indices = @transform_4, window_bounds = array<i64: 1, 128>}, {pipeline_mode = #tpu.pipeline_mode<synchronous>, transform_indices = @transform_5, window_bounds = array<i64: 128, 128>}, {pipeline_mode = #tpu.pipeline_mode<synchronous>, transform_indices = @transform_6, window_bounds = array<i64: 1, 128>}, {transform_indices = @transform_7, window_bounds = array<i64: 8, 128>}]} {
    %c0 = arith.constant 0 : index
    %c0_0 = arith.constant 0 : index
    %0 = vector.load %arg1[%c0, %c0_0] : memref<8x16xf32, #tpu.memory_space<vmem>>, vector<8x16xf32>
    %c0_1 = arith.constant 0 : index
    %c0_2 = arith.constant 0 : index
    %1 = vector.load %arg2[%c0_1, %c0_2] : memref<16x128xf32, #tpu.memory_space<vmem>>, vector<16x128xf32>
    %cst = arith.constant dense<0.000000e+00> : vector<8x128xf32>
    %2 = tpu.matmul %0, %1, %cst {dimension_numbers = #tpu.dot_dimension_numbers<[1], [0], [0], [1], [0, 0, 1, 1], [], []>} : vector<8x16xf32>, vector<16x128xf32>, vector<8x128xf32> -> vector<8x128xf32>
    %c0_3 = arith.constant 0 : index
    %c0_4 = arith.constant 0 : index
    %3 = vector.load %arg3[%c0_3, %c0_4] : memref<1x128xf32, #tpu.memory_space<vmem>>, vector<1x128xf32>
    %4 = vector.broadcast %3 : vector<1x128xf32> to vector<8x128xf32>
    %5 = arith.addf %2, %4 : vector<8x128xf32>
    %6 = math.tanh %5 : vector<8x128xf32>
    %c0_5 = arith.constant 0 : index
    %c0_6 = arith.constant 0 : index
    %7 = vector.load %arg4[%c0_5, %c0_6] : memref<128x128xf32, #tpu.memory_space<vmem>>, vector<128x128xf32>
    %cst_7 = arith.constant dense<0.000000e+00> : vector<8x128xf32>
    %8 = tpu.matmul %6, %7, %cst_7 {dimension_numbers = #tpu.dot_dimension_numbers<[1], [0], [0], [1], [0, 0, 1, 1], [], []>} : vector<8x128xf32>, vector<128x128xf32>, vector<8x128xf32> -> vector<8x128xf32>
    %c0_8 = arith.constant 0 : index
    %c0_9 = arith.constant 0 : index
    %9 = vector.load %arg5[%c0_8, %c0_9] : memref<1x128xf32, #tpu.memory_space<vmem>>, vector<1x128xf32>
    %10 = vector.broadcast %9 : vector<1x128xf32> to vector<8x128xf32>
    %11 = arith.addf %8, %10 : vector<8x128xf32>
    %12 = math.tanh %11 : vector<8x128xf32>
    %c0_10 = arith.constant 0 : index
    %c0_11 = arith.constant 0 : index
    %13 = vector.load %arg6[%c0_10, %c0_11] : memref<128x128xf32, #tpu.memory_space<vmem>>, vector<128x128xf32>
    %cst_12 = arith.constant dense<0.000000e+00> : vector<8x128xf32>
    %14 = tpu.matmul %12, %13, %cst_12 {dimension_numbers = #tpu.dot_dimension_numbers<[1], [0], [0], [1], [0, 0, 1, 1], [], []>} : vector<8x128xf32>, vector<128x128xf32>, vector<8x128xf32> -> vector<8x128xf32>
    %c0_13 = arith.constant 0 : index
    %c0_14 = arith.constant 0 : index
    %15 = vector.load %arg7[%c0_13, %c0_14] : memref<1x128xf32, #tpu.memory_space<vmem>>, vector<1x128xf32>
    %16 = vector.broadcast %15 : vector<1x128xf32> to vector<8x128xf32>
    %17 = arith.addf %14, %16 : vector<8x128xf32>
    %cst_15 = arith.constant 0.000000e+00 : f32
    %18 = vector.broadcast %cst_15 : f32 to vector<8x128xf32>
    %19 = arith.maximumf %17, %18 : vector<8x128xf32>
    %20 = math.absf %17 : vector<8x128xf32>
    %cst_16 = arith.constant 0.000000e+00 : f32
    %21 = vector.broadcast %cst_16 : f32 to vector<8x128xf32>
    %22 = arith.subf %21, %20 : vector<8x128xf32>
    %23 = math.exp %22 : vector<8x128xf32>
    %24 = math.log1p %23 : vector<8x128xf32>
    %25 = arith.addf %19, %24 : vector<8x128xf32>
    %c0_17 = arith.constant 0 : index
    %c0_18 = arith.constant 0 : index
    %26 = vector.load %arg8[%c0_17, %c0_18] : memref<8x128xf32, #tpu.memory_space<vmem>>, vector<8x128xf32>
    tpu.vector_store %arg8[%c0_17, %c0_18], %25 {strides = array<i32>} : memref<8x128xf32, #tpu.memory_space<vmem>>, vector<8x128xf32>,
    return
  }
  func.func @transform_0(%arg0: i32) -> (i32, i32) {
    %c0_i32 = arith.constant 0 : i32
    %c0_i32_0 = arith.constant 0 : i32
    return %arg0, %c0_i32 : i32, i32
  }
  func.func @transform_1(%arg0: i32) -> (i32, i32) {
    %c0_i32 = arith.constant 0 : i32
    %c0_i32_0 = arith.constant 0 : i32
    %c0_i32_1 = arith.constant 0 : i32
    return %c0_i32, %c0_i32_0 : i32, i32
  }
  func.func @transform_2(%arg0: i32) -> (i32, i32) {
    %c0_i32 = arith.constant 0 : i32
    %c0_i32_0 = arith.constant 0 : i32
    %c0_i32_1 = arith.constant 0 : i32
    return %c0_i32, %c0_i32_0 : i32, i32
  }
  func.func @transform_3(%arg0: i32) -> (i32, i32) {
    %c0_i32 = arith.constant 0 : i32
    %c0_i32_0 = arith.constant 0 : i32
    %c0_i32_1 = arith.constant 0 : i32
    return %c0_i32, %c0_i32_0 : i32, i32
  }
  func.func @transform_4(%arg0: i32) -> (i32, i32) {
    %c0_i32 = arith.constant 0 : i32
    %c0_i32_0 = arith.constant 0 : i32
    %c0_i32_1 = arith.constant 0 : i32
    return %c0_i32, %c0_i32_0 : i32, i32
  }
  func.func @transform_5(%arg0: i32) -> (i32, i32) {
    %c0_i32 = arith.constant 0 : i32
    %c0_i32_0 = arith.constant 0 : i32
    %c0_i32_1 = arith.constant 0 : i32
    return %c0_i32, %c0_i32_0 : i32, i32
  }
  func.func @transform_6(%arg0: i32) -> (i32, i32) {
    %c0_i32 = arith.constant 0 : i32
    %c0_i32_0 = arith.constant 0 : i32
    %c0_i32_1 = arith.constant 0 : i32
    return %c0_i32, %c0_i32_0 : i32, i32
  }
  func.func @transform_7(%arg0: i32) -> (i32, i32) {
    %c0_i32 = arith.constant 0 : i32
    %c0_i32_0 = arith.constant 0 : i32
    return %arg0, %c0_i32 : i32, i32
  }
}

</mosaic_0001>

<bundles_post_ra>
// kernel: mlp_beta_forward.1
= control target key start
LH: loop header
LB: loop body
LE: loop exit
PB: predicated region body
PF: predicated region fallthrough
CT: control target
= control target key end

     0   :  { %12 = vsyncpa [#allocation3], 0  ;;  %s838_s0 = inlined_call_operand.hbm [shape: f32[8,16], index: 0, kind: input, shape index: {}]   ;;  %s839_s1 = inlined_call_operand.hbm [shape: f32[16,128], index: 1, kind: input, shape index: {}]   ;;  %s840_s2 = inlined_call_operand.vmem [shape: f32[1,128], index: 2, kind: input, shape index: {}]   ;;  %s841_s3 = inlined_call_operand.hbm [shape: f32[128,128], index: 3, kind: input, shape index: {}]   ;;  %s842_s4 = inlined_call_operand.vmem [shape: f32[1,128], index: 4, kind: input, shape index: {}]   ;;  %s843_s5 = inlined_call_operand.hbm [shape: f32[128,128], index: 5, kind: input, shape index: {}]   ;;  %s844_s6 = inlined_call_operand.vmem [shape: f32[1,128], index: 6, kind: input, shape index: {}]   ;;  %s845_s7 = inlined_call_operand.hbm [shape: f32[8,128], index: 7, kind: output, shape index: {}]  }
   0x1   :  { %13 = vsyncpa [#allocation6], 0 }
   0x2   :  { %14 = vsyncpa [#allocation9], 0 }
   0x3   :  { %15 = vsyncpa [#allocation4], 0  ;;  %s690_s24 = smov [#allocation5]   ;;  %s572_s28 = scalar_lea.hbm %s839_s1, 256 }
   0x4   :  { %s31_s25 = sshll.u32 %s690_s24, 4  ;;  %p573_p0 = scmp.ne.s32.totalorder %s839_s1, %s572_s28  ;;  %s32_s25 = int_to_ptr.vmem [resolvable:$true] %s31_s25 }
   0x5   :  { %p576_p1 = scmp.lt.u32.totalorder %s572_s28, %s839_s1 }
   0x7   :  { %p578_p2 = pnand %p576_p1, %p573_p0 }
   0x9   :  { %581 = shalt.err (!%p578_p2)
}
   0xa   :  { %s582_s10 = scalar_lea.vmem %s32_s25, 256  ;;  %p587_p4 = scmp.lt.s32.totalorder %s32_s25, %s32_s25 }
   0xb   :  { %p583_p3 = scmp.ne.s32.totalorder %s32_s25, %s582_s10  ;;  %p588_p5 = scmp.lt.s32.totalorder %s582_s10, %s582_s10 }
   0xd   :  { %p589_p6 = por %p588_p5, %p587_p4 }
   0xf   :  { %p590_p7 = pnand %p589_p6, %p583_p3 }
  0x11   :  { %593 = shalt.err (!%p590_p7)
}
  0x12   :  { %s691_s11 = smov 128   ;;  %s692_s12 = smov 8  }
  0x13   :  { %37 = dma.hbm_to_vmem [thread:$0]  %s839_s1, 256, %s32_s25, [#allocation6], %s691_s11, %s691_s11, %s692_s12  }
  0x14   :  { %s693_s15 = smov [#allocation2]   ;;  %s694_s17 = smov [#allocation7]  }
  0x15   :  { %s22_s16 = sshll.u32 %s693_s15, 4  ;;  %s45_s18 = sshll.u32 %s694_s17, 4  ;;  %s23_s16 = int_to_ptr.vmem [resolvable:$true] %s22_s16  ;;  %s46_s18 = int_to_ptr.vmem [resolvable:$true] %s45_s18 }
  0x16   :  { %s594_s21 = scalar_lea.hbm %s838_s0, 128 }
  0x17   :  { %p595_p8 = scmp.ne.s32.totalorder %s838_s0, %s594_s21  ;;  %p598_p9 = scmp.lt.u32.totalorder %s594_s21, %s838_s0 }
  0x19   :  { %p600_p10 = pnand %p598_p9, %p595_p8 }
  0x1b   :  { %603 = shalt.err (!%p600_p10)
}
  0x1c   :  { %s604_s1 = scalar_lea.vmem %s23_s16, 128  ;;  %p609_p12 = scmp.lt.s32.totalorder %s23_s16, %s23_s16 }
  0x1d   :  { %p605_p11 = scmp.ne.s32.totalorder %s23_s16, %s604_s1  ;;  %p610_p13 = scmp.lt.s32.totalorder %s604_s1, %s604_s1 }
  0x1f   :  { %p611_p0 = por %p610_p13, %p609_p12 }
  0x21   :  { %p612_p1 = pnand %p611_p0, %p605_p11 }
  0x23   :  { %615 = shalt.err (!%p612_p1)
}
  0x24   :  { %25 = dma.hbm_to_vmem [thread:$0]  %s838_s0, 128, %s23_s16, [#allocation3]  }
  0x25   :  { %s616_s30 = scalar_lea.hbm %s841_s3, 2048 }
  0x26   :  { %p617_p2 = scmp.ne.s32.totalorder %s841_s3, %s616_s30  ;;  %p620_p3 = scmp.lt.u32.totalorder %s616_s30, %s841_s3 }
  0x28   :  { %p622_p4 = pnand %p620_p3, %p617_p2 }
  0x2a   :  { %625 = shalt.err (!%p622_p4)
}
  0x2b   :  { %s626_s14 = scalar_lea.vmem %s46_s18, 2048  ;;  %p631_p6 = scmp.lt.s32.totalorder %s46_s18, %s46_s18 }
  0x2c   :  { %p627_p5 = scmp.ne.s32.totalorder %s46_s18, %s626_s14  ;;  %p632_p7 = scmp.lt.s32.totalorder %s626_s14, %s626_s14 }
  0x2e   :  { %p633_p8 = por %p632_p7, %p631_p6 }
  0x30   :  { %p634_p9 = pnand %p633_p8, %p627_p5 }
  0x32   :  { %637 = shalt.err (!%p634_p9)
}
  0x33   :  { %51 = dma.hbm_to_vmem [thread:$0]  %s841_s3, 2048, %s46_s18, [#allocation6], %s691_s11, %s691_s11, %s692_s12  }
  0x34   :  { %s695_s16 = smov [#allocation8]   ;;  %s638_s21 = scalar_lea.hbm %s843_s5, 2048 }
  0x35   :  { %s59_s17 = sshll.u32 %s695_s16, 4  ;;  %p639_p10 = scmp.ne.s32.totalorder %s843_s5, %s638_s21  ;;  %s60_s17 = int_to_ptr.vmem [resolvable:$true] %s59_s17 }
  0x36   :  { %p642_p11 = scmp.lt.u32.totalorder %s638_s21, %s843_s5 }
  0x38   :  { %p644_p12 = pnand %p642_p11, %p639_p10 }
  0x3a   :  { %647 = shalt.err (!%p644_p12)
}
  0x3b   :  { %s648_s1 = scalar_lea.vmem %s60_s17, 2048  ;;  %p653_p0 = scmp.lt.s32.totalorder %s60_s17, %s60_s17 }
  0x3c   :  { %p649_p13 = scmp.ne.s32.totalorder %s60_s17, %s648_s1  ;;  %p654_p1 = scmp.lt.s32.totalorder %s648_s1, %s648_s1 }
  0x3e   :  { %p655_p2 = por %p654_p1, %p653_p0 }
  0x40   :  { %p656_p3 = pnand %p655_p2, %p649_p13 }
  0x42   :  { %659 = shalt.err (!%p656_p3)
}
  0x43   :  { %65 = dma.hbm_to_vmem [thread:$0]  %s843_s5, 2048, %s60_s17, [#allocation9], %s691_s11, %s691_s11, %s692_s12  }
  0x44   :  { %682 = dma.done.wait [#allocation3], 128  }
  0x45   :  { %683 = vsyncadd [#allocation3], 4294967168 }
  0x46   :  { %684 = dma.done.wait [#allocation6], 2304  }
  0x47   :  { %685 = vsyncadd [#allocation6], 4294964992 }
  0x48   :  { %686 = dma.done.wait [#allocation9], 2048  }
  0x49   :  { %687 = vsyncadd [#allocation9], 4294965248  ;;  %v696_v0 = vmov 0.0|0.0   ;;  %vm697_vm0 = vmmov 0   ;;  %v698_v1 = vmov 0.0   ;;  %v81_v2 = vld [vmem:[#allocation5] sm:$0xff] }
  0x4a   :  { %503 = vmatprep.subr.bf16.mxu0 %v696_v0  ;;  %430 = vmatprep.mubr.msk.f32.mxu0 %vm697_vm0, %v698_v1  ;;  %v82_v3 = vld [vmem:[#allocation5 + $0x8] sm:$0xff]  ;;  %v165_v5 = vld [vmem:[#allocation7] sm:$0xff]  ;;  %v166_v6 = vld [vmem:[#allocation7 + $0x8] sm:$0xff]  ;;  %vm90_vm1 = vcmask 130048  }
  0x4b   :  { %506 = vmatprep.subr.bf16.mxu1 %v696_v0  ;;  %465 = vmatprep.mubr.msk.f32.mxu1 %vm697_vm0, %v698_v1  ;;  %v504_v4 = vpack.c.bf16 %v82_v3, %v81_v2  ;;  %v167_v7 = vld [vmem:[#allocation7 + $0x10] sm:$0xff]  ;;  %v507_v8 = vpack.c.bf16 %v166_v6, %v165_v5  ;;  %v168_v9 = vld [vmem:[#allocation7 + $0x18] sm:$0xff]  ;;  %v80_v10 = vld [vmem:[#allocation2] sm:$0xff] }
  0x4c   :  { %v510_v11 = vpack.c.bf16 %v168_v9, %v167_v7  ;;  %v169_v12 = vld [vmem:[#allocation7 + $0x20] sm:$0xff]  ;;  %v170_v13 = vld [vmem:[#allocation7 + $0x28] sm:$0xff]  ;;  %v171_v15 = vld [vmem:[#allocation7 + $0x30] sm:$0xff] }
  0x4d   :  { %505 = vmatpush3.bf16.msra.mxu0 %v504_v4  ;;  %508 = vmatpush3.bf16.msra.mxu1 %v507_v8  ;;  %v513_v14 = vpack.c.bf16 %v170_v13, %v169_v12  ;;  %v172_v16 = vld [vmem:[#allocation7 + $0x38] sm:$0xff]  ;;  %v173_v18 = vld [vmem:[#allocation7 + $0x40] sm:$0xff]  ;;  %v174_v19 = vld [vmem:[#allocation7 + $0x48] sm:$0xff] }
  0x4e   :  { %530 = vmatprep.subr.bf16.mxu0 %v696_v0  ;;  %509 = vmatprep.subr.bf16.mxu1 %v696_v0  ;;  %v516_v17 = vpack.c.bf16 %v172_v16, %v171_v15  ;;  %v519_v20 = vpack.c.bf16 %v174_v19, %v173_v18  ;;  %v175_v21 = vld [vmem:[#allocation7 + $0x50] sm:$0xff]  ;;  %v176_v22 = vld [vmem:[#allocation7 + $0x58] sm:$0xff]  ;;  %v177_v24 = vld [vmem:[#allocation7 + $0x60] sm:$0xff] }
  0x4f   :  { %v522_v23 = vpack.c.bf16 %v176_v22, %v175_v21  ;;  %v178_v25 = vld [vmem:[#allocation7 + $0x68] sm:$0xff]  ;;  %v179_v27 = vld [vmem:[#allocation7 + $0x70] sm:$0xff]  ;;  %v180_v28 = vld [vmem:[#allocation7 + $0x78] sm:$0xff] }
  0x50   :  { %431 = vmatmul.mubr.msk.f32.vlgmr.msra.gmra.mrb[0].mxu0 %vm90_vm1, %v80_v10  ;;  %v525_v26 = vpack.c.bf16 %v178_v25, %v177_v24  ;;  %v528_v29 = vpack.c.bf16 %v180_v28, %v179_v27  ;;  %v259_v30 = vld [vmem:[#allocation8] sm:$0xff]  ;;  %v260_v31 = vld [vmem:[#allocation8 + $0x8] sm:$0xff]  ;;  %v261_v32 = vld [vmem:[#allocation8 + $0x10] sm:$0xff] }
  0x51   :  { %500 = vmatprep.mubr.msk.f32.mxu0 %vm697_vm0, %v698_v1  ;;  %511 = vmatpush3.bf16.msra.mxu1 %v510_v11  ;;  %v531_v33 = vpack.c.bf16 %v260_v31, %v259_v30  ;;  %v262_v34 = vld [vmem:[#allocation8 + $0x18] sm:$0xff]  ;;  %v263_v36 = vld [vmem:[#allocation8 + $0x20] sm:$0xff]  ;;  %v264_v37 = vld [vmem:[#allocation8 + $0x28] sm:$0xff] }
  0x52   :  { %512 = vmatprep.subr.bf16.mxu1 %v696_v0  ;;  %v534_v35 = vpack.c.bf16 %v262_v34, %v261_v32  ;;  %v537_v38 = vpack.c.bf16 %v264_v37, %v263_v36  ;;  %v265_v39 = vld [vmem:[#allocation8 + $0x30] sm:$0xff]  ;;  %v266_v40 = vld [vmem:[#allocation8 + $0x38] sm:$0xff]  ;;  %v267_v42 = vld [vmem:[#allocation8 + $0x40] sm:$0xff] }
  0x53   :  { %532 = vmatpush3.bf16.msra.mxu0 %v531_v33  ;;  %v540_v41 = vpack.c.bf16 %v266_v40, %v265_v39  ;;  %v268_v43 = vld [vmem:[#allocation8 + $0x48] sm:$0xff]  ;;  %v269_v50 = vld [vmem:[#allocation8 + $0x50] sm:$0xff]  ;;  %v270_v51 = vld [vmem:[#allocation8 + $0x58] sm:$0xff] }
  0x54   :  { %533 = vmatprep.subr.bf16.mxu0 %v696_v0  ;;  %v543_v44 = vpack.c.bf16 %v268_v43, %v267_v42  ;;  %v385_v45 = vld [vmem:[%s840_s2] ss:$0 sm:$0xff]  ;;  %v546_v52 = vpack.c.bf16 %v270_v51, %v269_v50  ;;  %v271_v53 = vld [vmem:[#allocation8 + $0x60] sm:$0xff]  ;;  %v273_v56 = vld [vmem:[#allocation8 + $0x70] sm:$0xff] }
  0x55   :  { %514 = vmatpush3.bf16.msra.mxu1 %v513_v14  ;;  %v272_v54 = vld [vmem:[#allocation8 + $0x68] sm:$0xff]  ;;  %v274_v57 = vld [vmem:[#allocation8 + $0x78] sm:$0xff] }
  0x56   :  { %515 = vmatprep.subr.bf16.mxu1 %v696_v0  ;;  %v549_v55 = vpack.c.bf16 %v272_v54, %v271_v53  ;;  %v552_v58 = vpack.c.bf16 %v274_v57, %v273_v56  ;;  %v387_v59 = vld [vmem:[%s842_s4] ss:$0 sm:$0xff]  ;;  %s699_s4 = smov [#allocation10]  }
  0x57   :  { %535 = vmatpush3.bf16.msra.mxu0 %v534_v35  ;;  %v388_v1 = vld [vmem:[%s844_s6] ss:$0 sm:$0xff]  ;;  %s374_s28 = sshll.u32 %s699_s4, 4  ;;  %s375_s28 = int_to_ptr.vmem [resolvable:$true] %s374_s28 }
  0x58   :  { %536 = vmatprep.subr.bf16.mxu0 %v696_v0  ;;  %s660_s6 = scalar_lea.vmem %s375_s28, 128  ;;  %p665_p5 = scmp.lt.s32.totalorder %s375_s28, %s375_s28 }
  0x59   :  { %517 = vmatpush3.bf16.msra.mxu1 %v516_v17  ;;  %p661_p4 = scmp.ne.s32.totalorder %s375_s28, %s660_s6  ;;  %p666_p6 = scmp.lt.s32.totalorder %s660_s6, %s660_s6 }
  0x5a   :  { %518 = vmatprep.subr.bf16.mxu1 %v696_v0 }
  0x5b   :  { %538 = vmatpush3.bf16.msra.mxu0 %v537_v38  ;;  %p667_p7 = por %p666_p6, %p665_p5 }
  0x5c   :  { %539 = vmatprep.subr.bf16.mxu0 %v696_v0 }
  0x5d   :  { %520 = vmatpush3.bf16.msra.mxu1 %v519_v20  ;;  %p668_p8 = pnand %p667_p7, %p661_p4 }
  0x5e   :  { %521 = vmatprep.subr.bf16.mxu1 %v696_v0 }
  0x5f   :  { %541 = vmatpush3.bf16.msra.mxu0 %v540_v41 }
  0x60   :  { %542 = vmatprep.subr.bf16.mxu0 %v696_v0 }
  0x61   :  { %523 = vmatpush3.bf16.msra.mxu1 %v522_v23 }
  0x62   :  { %524 = vmatprep.subr.bf16.mxu1 %v696_v0 }
  0x63   :  { %544 = vmatpush3.bf16.msra.mxu0 %v543_v44 }
  0x64   :  { %545 = vmatprep.subr.bf16.mxu0 %v696_v0 }
  0x65   :  { %526 = vmatpush3.bf16.msra.mxu1 %v525_v26 }
  0x66   :  { %527 = vmatprep.subr.bf16.mxu1 %v696_v0 }
  0x67   :  { %547 = vmatpush3.bf16.msra.mxu0 %v546_v52 }
  0x68   :  { %548 = vmatprep.subr.bf16.mxu0 %v696_v0 }
  0x69   :  { %529 = vmatpush3.bf16.msra.mxu1 %v528_v29 }
  0x6b   :  { %550 = vmatpush3.bf16.msra.mxu0 %v549_v55 }
  0x6c   :  { %551 = vmatprep.subr.bf16.mxu0 %v696_v0 }
  0x6f   :  { %553 = vmatpush3.bf16.msra.mxu0 %v552_v58 }
 0x123   :  { %v160_v46 = vpop.f32.mrb[0].mxu0 }
 0x124   :  { %v161_v47 = vadd.f32 %v385_v45, %v160_v46  ;;  %v432_v48 = vpop.f32.mrb[1].mxu0 }
 0x126   :  { %564 = vtanh.f32 %v161_v47 }
 0x130   :  { %v565_v49 = vpop.eup %564 }
 0x131   :  { %466 = vmatmul.mubr.f32.vlgmr.msra.gmra.mrb[0].mxu1 %v565_v49 }
 0x204   :  { %v254_v60 = vpop.f32.mrb[0].mxu1 }
 0x205   :  { %v255_v61 = vadd.f32 %v387_v59, %v254_v60  ;;  %v467_v62 = vpop.f32.mrb[1].mxu1 }
 0x207   :  { %566 = vtanh.f32 %v255_v61 }
 0x211   :  { %v567_v63 = vpop.eup %566 }
 0x212   :  { %501 = vmatmul.mubr.f32.vlgmr.msra.gmra.mrb[2].mxu0 %v567_v63 }
 0x2e5   :  { %v348_v2 = vpop.f32.mrb[2].mxu0 }
 0x2e6   :  { %v349_v3 = vadd.f32 %v388_v1, %v348_v2  ;;  %v502_v4 = vpop.f32.mrb[3].mxu0 }
 0x2e8   :  { %v353_v5 = vand.u32 2147483647, %v349_v3  ;;  %v352_v15 = vmax.f32 %v349_v3, 0.0 }
 0x2ea   :  { %v354_v0 = vsub.f32 0.0, %v353_v5 }
 0x2ec   :  { %v355_v6 = vmul.f32 1.442695, %v354_v0 }
 0x2ee   :  { %568 = vpow2.f32 %v355_v6 }
 0x2f8   :  { %v569_v7 = vpop.eup %568 }
 0x2f9   :  { %v357_v8 = vadd.f32 1.0, %v569_v7  ;;  %v360_v9 = vmul.f32 -0.5, %v569_v7  ;;  %v363_v11 = vand.u32 2147483647, %v569_v7 }
 0x2fb   :  { %570 = vlog2.f32 %v357_v8  ;;  %v361_v10 = vadd.f32 1.0, %v360_v9  ;;  %vm364_vm2 = vcmp.lt.f32.partialorder %v363_v11, 0.0004427343 }
 0x2fd   :  { %v362_v14 = vmul.f32 %v569_v7, %v361_v10 }
 0x305   :  { %v571_v12 = vpop.eup %570 }
 0x306   :  { %v359_v13 = vmul.f32 0.6931472, %v571_v12 }
 0x308   :  { %v365_v16 = vsel %vm364_vm2, %v362_v14, %v359_v13 }
 0x309   :  { %v366_v17 = vadd.f32 %v365_v16, %v352_v15 }
 0x30b   :  { %367 = vst [vmem:[#allocation10] sm:$0xff] %v366_v17 }
 0x30c   :  { %671 = shalt.err (!%p668_p8)
}
 0x30d   :  { %s672_s8 = scalar_lea.hbm %s845_s7, 128 }
 0x30e   :  { %p673_p9 = scmp.ne.s32.totalorder %s845_s7, %s672_s8  ;;  %p676_p10 = scmp.lt.u32.totalorder %s672_s8, %s845_s7 }
 0x310   :  { %p678_p11 = pnand %p676_p10, %p673_p9 }
 0x312   :  { %681 = shalt.err (!%p678_p11)
}
 0x313   :  { %377 = dma.vmem_to_hbm [thread:$0]  %s375_s28, 128, %s845_s7, [#allocation4]  }
 0x314   :  { %688 = dma.done.wait [#allocation4], 128  }
 0x315   :  { %689 = vsyncadd [#allocation4], 4294967168 }
 0x316   :  { %381 = vsyncpa [#allocation3], 1 }
 0x317   :  { %382 = vsyncpa [#allocation6], 1 }
 0x318   :  { %383 = vsyncpa [#allocation9], 1 }
 0x319   :  { %384 = vsyncpa [#allocation4], 1 }

</bundles_post_ra>
